<compile_context>
chip_gen: v7x
topology: tpu7x:2x2x1
jax: 0.10.0
libtpu: 0.0.40
codegen_flags: <defaults>
</compile_context>

<pallas_src>
import jax
import jax.numpy as jnp
from jax.experimental import pallas as pl
from jax.experimental.pallas import tpu as pltpu

_LANE = 128
_SUBLANE = 8
_TARGET_BLOCK_BYTES = 4 * 1024 * 1024   # ~4 MiB per block, any dtype
_VMEM_LIMIT_BYTES = 48 * 1024 * 1024    # explicit; < v7x's 64 MiB physical VMEM


def _round_up(x, m):
    return ((x + m - 1) // m) * m


# ---------------------------------------------------------------------------
# Kernels
# ---------------------------------------------------------------------------
def _sigmoid_kernel(x_ref, o_ref):
    # Purely elementwise; f32 compute is safe on every generation (v5e has no
    # bf16 VPU/EUP) and the kernel is HBM-bound anyway.
    x = x_ref[...].astype(jnp.float32)
    o_ref[...] = jax.nn.sigmoid(x).astype(o_ref.dtype)


def _softmax_kernel(x_ref, o_ref):
    # Channel softmax: the channel axis is axis=1 of the block for both the
    # 4-D (bn, C, s_tile, 128) and the 3-D (bn, C, hw_tile) layouts.
    x = x_ref[...].astype(jnp.float32)
    m = jnp.max(x, axis=1, keepdims=True)
    e = jnp.exp(x - m)
    denom = jnp.sum(e, axis=1, keepdims=True)
    # Exact division: only elems/C values, free under the HBM roofline, and it
    # matches the PyTorch reference to f32 precision.
    o_ref[...] = (e / denom).astype(o_ref.dtype)


# ---------------------------------------------------------------------------
# Sigmoid path
# ---------------------------------------------------------------------------
def _sigmoid(x):
    orig_shape = x.shape
    total = x.size
    block_elems = max(_SUBLANE * _LANE, _TARGET_BLOCK_BYTES // x.dtype.itemsize)

    # Zero-copy 2-D view.  Prefer a lane width that is a multiple of 128 and
    # divides the total element count (keeps every store lane-dense) while
    # leaving >= 8 rows for sublane density when the tensor is big enough.
    cols = None
    if total % _LANE == 0:
        cap_k = max(1, min(total // (_LANE * _SUBLANE), 64))   # cols <= 8192
        for k in range(cap_k, 0, -1):
            if total % (_LANE * k) == 0:
                cols = _LANE * k
                break
    if cols is None:
        # No 128-multiple divisor: natural (n*c, h*w) view; ragged lane blocks
        # (if any) are masked on store by Pallas.
        cols = orig_shape[-2] * orig_shape[-1]
    rows = total // cols
    x2 = x.reshape(rows, cols)

    # Lane (column) tiling.
    if cols * _SUBLANE <= block_elems:
        bc = cols                                             # full lane extent
    else:
        bc = max(_LANE, (block_elems // _SUBLANE) // _LANE * _LANE)
    # Row tiling: multiple of 8, or the full row extent.
    br_cap = max(_SUBLANE, (block_elems // bc) // _SUBLANE * _SUBLANE)
    br = rows if rows <= br_cap else br_cap

    grid_r = pl.cdiv(rows, br)
    grid_c = pl.cdiv(cols, bc)
    # v7x has 2 TensorCores: keep >= 2 parallel grid steps when possible.
    if grid_r * grid_c < 2:
        if rows > _SUBLANE:
            br = _round_up(pl.cdiv(rows, 2), _SUBLANE)
            grid_r = pl.cdiv(rows, br)
        elif cols >= 2 * _LANE:
            bc = _round_up(pl.cdiv(cols, 2), _LANE)
            grid_c = pl.cdiv(cols, bc)

    out = pl.pallas_call(
        _sigmoid_kernel,
        out_shape=jax.ShapeDtypeStruct((rows, cols), x.dtype),
        grid_spec=pltpu.PrefetchScalarGridSpec(
            num_scalar_prefetch=0,
            grid=(grid_r, grid_c),
            in_specs=[pl.BlockSpec((br, bc), lambda r, s: (r, s))],
            out_specs=pl.BlockSpec((br, bc), lambda r, s: (r, s)),
        ),
        compiler_params=pltpu.CompilerParams(
            dimension_semantics=("parallel", "parallel"),
            vmem_limit_bytes=_VMEM_LIMIT_BYTES,
        ),
        cost_estimate=pl.CostEstimate(
            flops=4 * total,
            transcendentals=total,
            bytes_accessed=2 * total * x.dtype.itemsize,
        ),
    )(x2)
    return out.reshape(orig_shape)


# ---------------------------------------------------------------------------
# Channel softmax path (softmax / softmax2d over dim=1 of NCHW)
# ---------------------------------------------------------------------------
def _channel_softmax(x):
    n, c, h, w = x.shape
    hw = h * w
    total = n * c * hw
    itemsize = x.dtype.itemsize
    block_elems = max(_SUBLANE * _LANE, _TARGET_BLOCK_BYTES // itemsize)

    if hw % _LANE == 0:
        # Preferred layout: (n, C, s, 128) -- block minor dims are spatial, so
        # C never lands on the sublane axis (no padding/vreg waste for C < 8)
        # and the channel reduce is a cheap per-lane VPU combine.  DMA segments
        # are bs*128*itemsize contiguous (>= 4 KiB) even for large C.
        s = hw // _LANE
        x_view = x.reshape(n, c, s, _LANE)
        bs_cap = max(_SUBLANE, (block_elems // (c * _LANE)) // _SUBLANE * _SUBLANE)
        bs = s if s <= bs_cap else bs_cap
        bn = min(n, max(1, block_elems // (c * bs * _LANE)))
        grid_n = pl.cdiv(n, bn)
        grid_s = pl.cdiv(s, bs)
        # v7x megacore: keep >= 2 parallel grid steps when possible.
        if grid_n * grid_s < 2:
            if n > 1:
                bn = pl.cdiv(n, 2)
                grid_n = pl.cdiv(n, bn)
            elif s > _SUBLANE:
                bs = _round_up(pl.cdiv(s, 2), _SUBLANE)
                grid_s = pl.cdiv(s, bs)
        block = (bn, c, bs, _LANE)
        index_map = lambda b, t: (b, 0, t, 0)
        out_view_shape = (n, c, s, _LANE)
    else:
        # Fallback (hw not a 128 multiple): (n, C, hw) with C on the sublane
        # axis; ragged last lane blocks (if any) are masked on store.  Columns
        # of the channel softmax are independent, so masking is safe.
        x_view = x.reshape(n, c, hw)
        c_pad = max(c, _SUBLANE)                    # sublane padding for small C
        if c_pad * hw <= block_elems:
            tile = hw                               # full lane extent
        else:
            tile = max(_LANE, (block_elems // c_pad) // _LANE * _LANE)
        bn = min(n, max(1, block_elems // (c_pad * tile)))
        grid_n = pl.cdiv(n, bn)
        grid_s = pl.cdiv(hw, tile)
        if grid_n * grid_s < 2:
            if n > 1:
                bn = pl.cdiv(n, 2)
                grid_n = pl.cdiv(n, bn)
            elif hw >= 2 * _LANE:
                tile = _round_up(pl.cdiv(hw, 2), _LANE)
                grid_s = pl.cdiv(hw, tile)
        block = (bn, c, tile)
        index_map = lambda b, t: (b, 0, t)
        out_view_shape = (n, c, hw)

    out = pl.pallas_call(
        _softmax_kernel,
        out_shape=jax.ShapeDtypeStruct(out_view_shape, x.dtype),
        grid_spec=pltpu.PrefetchScalarGridSpec(
            num_scalar_prefetch=0,
            grid=(grid_n, grid_s),
            in_specs=[pl.BlockSpec(block, index_map)],
            out_specs=pl.BlockSpec(block, index_map),
        ),
        compiler_params=pltpu.CompilerParams(
            dimension_semantics=("parallel", "parallel"),
            vmem_limit_bytes=_VMEM_LIMIT_BYTES,
        ),
        cost_estimate=pl.CostEstimate(
            flops=6 * total,
            transcendentals=total,
            bytes_accessed=2 * total * itemsize,
        ),
    )(x_view)
    return out.reshape(n, c, h, w)


def activation_maker(x, activation_name):
    """Pallas TPU equivalent of ActivationMaker.forward for NCHW inputs."""
    if activation_name is None:
        # Identity path: no kernel launch, no HBM round-trip.
        return x
    assert activation_name in ("sigmoid", "softmax2d", "softmax")
    if activation_name == "sigmoid":
        return _sigmoid(x)
    # torch.nn.Softmax2d == softmax over channels (dim=1) for NCHW;
    # torch.nn.Softmax() with dim=None on a 4-D tensor also resolves to dim=1.
    return _channel_softmax(x)


if __name__ == "__main__":
    key = jax.random.PRNGKey(0)
    x = jax.random.normal(key, (2, 4, 16, 16), dtype=jnp.float32)

    results = {}
    for name in ("sigmoid", "softmax2d", "softmax", None):
        results[name] = jax.block_until_ready(activation_maker(x, name))

    # Reference checks (plain JAX).  Exact normalization -> tight tolerances.
    ref_sigmoid = jax.nn.sigmoid(x)
    ref_softmax = jax.nn.softmax(x, axis=1)
    assert jnp.allclose(results["sigmoid"], ref_sigmoid, atol=1e-5)
    assert jnp.allclose(results["softmax2d"], ref_softmax, atol=1e-5)
    assert jnp.allclose(results["softmax"], ref_softmax, atol=1e-5)
    assert jnp.allclose(results[None], x)

    # Odd (non-128-aligned) spatial size: exercises the no-pad fallback layouts.
    x_odd = jax.random.normal(jax.random.PRNGKey(0), (2, 3, 15, 15), dtype=jnp.float32)
    y_sig = jax.block_until_ready(activation_maker(x_odd, "sigmoid"))
    y_sm = jax.block_until_ready(activation_maker(x_odd, "softmax2d"))
    assert jnp.allclose(y_sig, jax.nn.sigmoid(x_odd), atol=1e-5)
    assert jnp.allclose(y_sm, jax.nn.softmax(x_odd, axis=1), atol=1e-5)

    print("KERNEL_OK")
</pallas_src>

<mosaic_0001>
module attributes {stable_mosaic.version = 11 : i64} {
  func.func @_sigmoid_kernel(%arg0: i32, %arg1: i32, %arg2: memref<8x128xf32, #tpu.memory_space<vmem>>, %arg3: memref<8x128xf32, #tpu.memory_space<vmem>>) attributes {dimension_semantics = [#tpu.dimension_semantics<parallel>, #tpu.dimension_semantics<parallel>], iteration_bounds = array<i64: 1, 2>, scalar_prefetch = 0 : i64, scratch_operands = 0 : i64, tpu.core_type = #tpu.core_type<tc>, window_params = [{transform_indices = @transform_0, window_bounds = array<i64: 8, 128>}, {transform_indices = @transform_1, window_bounds = array<i64: 8, 128>}]} {
    %c0 = arith.constant 0 : index
    %c0_0 = arith.constant 0 : index
    %0 = vector.load %arg2[%c0, %c0_0] : memref<8x128xf32, #tpu.memory_space<vmem>>, vector<8x128xf32>
    %1 = arith.negf %0 : vector<8x128xf32>
    %2 = math.exp %1 : vector<8x128xf32>
    %cst = arith.constant 1.000000e+00 : f32
    %3 = vector.broadcast %cst : f32 to vector<8x128xf32>
    %4 = arith.addf %3, %2 : vector<8x128xf32>
    %5 = arith.divf %3, %4 : vector<8x128xf32>
    %c0_1 = arith.constant 0 : index
    %c0_2 = arith.constant 0 : index
    %6 = vector.load %arg3[%c0_1, %c0_2] : memref<8x128xf32, #tpu.memory_space<vmem>>, vector<8x128xf32>
    tpu.vector_store %arg3[%c0_1, %c0_2], %5 {strides = array<i32>} : memref<8x128xf32, #tpu.memory_space<vmem>>, vector<8x128xf32>,
    return
  }
  func.func @transform_0(%arg0: i32, %arg1: i32) -> (i32, i32) {
    %c0_i32 = arith.constant 0 : i32
    return %arg0, %arg1 : i32, i32
  }
  func.func @transform_1(%arg0: i32, %arg1: i32) -> (i32, i32) {
    %c0_i32 = arith.constant 0 : i32
    return %arg0, %arg1 : i32, i32
  }
}

</mosaic_0001>

<bundles_post_ra>
// kernel: tpu_custom_call.1
= control target key start
LH: loop header
LB: loop body
LE: loop exit
PB: predicated region body
PF: predicated region fallthrough
CT: control target
= control target key end

     0   :  { %6 = vsyncpa [#allocation3], 0  ;;  %s634_s0 = inlined_call_operand.hbm [shape: f32[8,256], index: 0, kind: input, shape index: {}]   ;;  %s635_s1 = inlined_call_operand.hbm [shape: f32[8,256], index: 1, kind: output, shape index: {}]  }
   0x1   :  { %8 = vsyncpa [#allocation3 + $0x1], 0 }
   0x2   :  { %9 = vsyncpa [#allocation4], 0 }
   0x3   :  { %11 = vsyncpa [#allocation4 + $0x1], 0  ;;  %s462_s6 = smov 0   ;;  %s464_s7 = smov 0  }
   0x4   :  { %s466_s8 = smov 0   ;;  %s468_s9 = smov 0  }
   0x5   :  { %s470_s10 = smov 0   ;;  %s472_s11 = smov 0  }
   0x6 LB: > { %s256_s12 = sadd.s32 4294967295, %s448_s11   ;;  %s257_s13 = sadd.s32 4294967294, %s448_s11   ;;  %s448_s11 = sphi %s472_s11, %s17_s11   ;;  %s444_s10 = sphi %s470_s10, %s651_s10   ;;  %s440_s9 = sphi %s468_s9, %s650_s9   ;;  %s436_s8 = sphi %s466_s8, %s649_s8   ;;  %s432_s7 = sphi %s464_s7, %s648_s7   ;;  %s428_s6 = sphi %s462_s6, %s647_s6  }
   0x7   : > { %s26_s14 = sadd.s32 1, %s444_s10  ;;  %s38_s15 = sadd.s32 1, %s436_s8 }
   0x8   : > { %p27_p0 = scmp.ge.s32.totalorder %s26_s14, 2  ;;  %p45_p1 = scmp.ne.s32.totalorder %s436_s8, %s432_s7 }
   0x9   : > { %p46_p2 = scmp.eq.s32.totalorder %s448_s11, 0  ;;  %p51_p3 = scmp.ne.s32.totalorder %s432_s7, %s428_s6 }
   0xa   : > { %s653_s14 = smov (%p27_p0, %s26_s14), 0  ;;  %p52_p5 = scmp.eq.s32.totalorder %s256_s12, 0 }
   0xb   : > { %p503_p4 = por %p46_p2, %p45_p1  ;;  %s34_s17 = ssub.s32 %s444_s10, %s653_s14 }
   0xc   : > { %p77_p6 = scmp.eq.s32.totalorder %s256_s12, 1  ;;  %p36_p7 = scmp.eq.s32.totalorder %s34_s17, 0 }
   0xd   : > { %p509_p8 = por %p52_p5, %p51_p3  ;;  %p83_p10 = scmp.eq.s32.totalorder %s257_s13, 1 }
   0xe   : > { %p513_p9 = por %p77_p6, %p45_p1  ;;  %p282_p13 = scmp.lt.s32.totalorder %s448_s11, 2 }
   0xf   : > { %s518_s20 = scalar_select %p36_p7, %s436_s8, %s38_s15  }
  0x10   : > { %s639_s19 = scalar_select %p513_p9, 1, 0 }
  0x11   : > { %p520_p11 = por %p83_p10, %p51_p3  ;;  %s103_s22 = sand.u32 1, %s436_s8  }
  0x12   : > { %s260_s23 = sshll.u32 %s103_s22, 3  ;;  %s261_s24 = sshll.u32 %s444_s10, 7 }
  0x13   : > { %s640_s21 = scalar_select %p520_p11, 1, 0 }
  0x14   : > { %s531_s27 = scalar_lea.hbm %s634_s0, %s261_s24  ;;  %s107_s28 = scalar_lea.vmem [#allocation2], %s260_s23 }
  0x15   : > { %s116_s29 = sshll.u32 %s107_s28, 4  ;;  %p537_p0 = pnand %p282_p13, %p503_p4  ;;  %s533_s29 = int_to_ptr.vmem [resolvable:$true] %s116_s29 }
  0x16   : > { %s104_s2 = scalar_lea.sflag [#allocation3], %s103_s22  ;;  %s336_s3 = scalar_lea.hbm %s531_s27, 128 }
  0x17   : > { %p337_p3 = scmp.ne.s32.totalorder %s531_s27, %s336_s3  ;;  %p338_p5 = pneg %p537_p0 }
  0x18   : > { %s341_s12 = scalar_lea.hbm %s634_s0, 256  ;;  %p342_p4 = scmp.lt.u32.totalorder %s531_s27, %s634_s0 }
  0x19   : > { %p339_p6 = pnand %p338_p5, %p337_p3  ;;  %p343_p10 = scmp.lt.u32.totalorder %s341_s12, %s336_s3 }
  0x1a   : > { %p345_p12 = scmp.lt.u32.totalorder %s336_s3, %s531_s27 }
  0x1b   : > { %p340_p7 = pneg %p339_p6  ;;  %p344_p13 = por %p343_p10, %p342_p4 }
  0x1d   : > { %p346_p1 = por %p345_p12, %p344_p13 }
  0x1f   : > { %p347_p2 = pnand %p346_p1, %p340_p7 }
  0x21   : > { %350 = shalt.err (!%p347_p2)
}
  0x22   : > { %s351_s16 = scalar_lea.vmem %s533_s29, 128  ;;  %s450_s17 = smov [#allocation2]  }
  0x23   : > { %p352_p3 = scmp.ne.s32.totalorder %s533_s29, %s351_s16  ;;  %s356_s22 = sshll.u32 %s450_s17, 4  ;;  %s357_s22 = int_to_ptr.vmem [resolvable:$false] %s356_s22 }
  0x24   : > { %s358_s23 = scalar_lea.vmem %s357_s22, 256  ;;  %p359_p9 = scmp.lt.s32.totalorder %s533_s29, %s357_s22 }
  0x25   : > { %p354_p6 = pnand %p352_p3, %p338_p5  ;;  %p360_p4 = scmp.lt.s32.totalorder %s358_s23, %s351_s16 }
  0x27   : > { %p355_p11 = pneg %p354_p6  ;;  %p361_p10 = por %p360_p4, %p359_p9 }
  0x29   : > { %p362_p12 = pnand %p361_p10, %p355_p11 }
  0x2b   : > { %365 = shalt.err (!%p362_p12)
}
  0x2c   : > { %277 = dma.hbm_to_vmem [thread:$0]  (!%p537_p0), %s531_s27, 128, %s533_s29, %s104_s2  }
  0x2d   : > { %p642_p1 = scmp.lt.s32.totalorder %s448_s11, 3  ;;  %p643_p2 = scmp.ge.s32.totalorder %s448_s11, 1 }
  0x2f   : > { %p122_p5 = pnand %p643_p2, %p642_p1 }
  0x30   : > { %s573_s24 = sand.u32 (!%p122_p5), 1, %s432_s7  }
  0x31   : > { %125 = sbr.rel (%p122_p5) target bundleno = 98 (0x62), region = 24  ;;  %s263_s25 = sshll.u32 (!%p122_p5), %s573_s24, 3 }
  0x32   : > { %s128_s26 = scalar_lea.sflag (!%p122_p5), [#allocation3], %s573_s24  ;;  %s131_s28 = scalar_lea.vmem (!%p122_p5), [#allocation2], %s263_s25 }
  0x38   : > { %419 = dma.done.wait (%p509_p8), %s128_s26, 128  }
  0x39   : > { %421 = vsyncadd (%p509_p8), %s128_s26, 4294967168  ;;  %v150_v0 = vld [vmem:[%s131_s28] sm:$0xff]  ;;  %s149_s27 = scalar_lea.vmem [#allocation5], %s263_s25  ;;  %s267_s30 = sshll.u32 %s440_s9, 7 }
  0x3a   : > { %v265_v1 = vmul.f32 -1.442695, %v150_v0  ;;  %s174_s29 = sshll.u32 %s149_s27, 4  ;;  %s587_s18 = scalar_lea.hbm %s635_s1, %s267_s30  ;;  %s582_s29 = int_to_ptr.vmem [resolvable:$true] %s174_s29 }
  0x3b   : > { %s159_s4 = scalar_lea.sflag [#allocation4], %s573_s24  ;;  %s366_s5 = scalar_lea.vmem %s582_s29, 128 }
  0x3c   : > { %332 = vpow2.f32 %v265_v1  ;;  %p367_p8 = scmp.ne.s32.totalorder %s582_s29, %s366_s5  ;;  %p644_p9 = scmp.ne.s32.totalorder %s639_s19, 0 }
  0x3d   : > { %s451_s12 = smov [#allocation5]  }
  0x3e   : > { %p368_p11 = pnand %p367_p8, %p644_p9  ;;  %s370_s9 = sshll.u32 %s451_s12, 4  ;;  %s371_s9 = int_to_ptr.vmem [resolvable:$false] %s370_s9 }
  0x3f   : > { %s372_s13 = scalar_lea.vmem %s371_s9, 256  ;;  %p373_p7 = scmp.lt.s32.totalorder %s582_s29, %s371_s9 }
  0x40   : > { %p369_p0 = pneg %p368_p11  ;;  %p374_p13 = scmp.lt.s32.totalorder %s372_s13, %s366_s5 }
  0x42   : > { %p375_p3 = por %p374_p13, %p373_p7 }
  0x44   : > { %p376_p6 = pnand %p375_p3, %p369_p0 }
  0x46   : > { %v333_v2 = vpop.eup %332 }
  0x47   : > { %v154_v3 = vadd.f32 1.0, %v333_v2 }
  0x49   : > { %334 = vrcp.f32 %v154_v3 }
  0x53   : > { %v335_v4 = vpop.eup %334 }
  0x54   : > { %157 = vst [vmem:[%s149_s27] sm:$0xff] %v335_v4 }
  0x55   : > { %379 = shalt.err (!%p376_p6)
}
  0x56   : > { %s380_s15 = scalar_lea.hbm %s587_s18, 128  ;;  %s384_s22 = scalar_lea.hbm %s635_s1, 256 }
  0x57   : > { %p381_p4 = scmp.ne.s32.totalorder %s587_s18, %s380_s15  ;;  %p385_p1 = scmp.lt.u32.totalorder %s587_s18, %s635_s1 }
  0x58   : > { %p386_p2 = scmp.lt.u32.totalorder %s384_s22, %s380_s15  ;;  %p388_p8 = scmp.lt.u32.totalorder %s380_s15, %s587_s18 }
  0x59   : > { %p382_p10 = pnand %p381_p4, %p644_p9 }
  0x5a   : > { %p387_p5 = por %p386_p2, %p385_p1 }
  0x5b   : > { %p383_p12 = pneg %p382_p10 }
  0x5c   : > { %p389_p11 = por %p388_p8, %p387_p5 }
  0x5e   : > { %p390_p0 = pnand %p389_p11, %p383_p12 }
  0x60   : > { %393 = shalt.err (!%p390_p0)
}
  0x61   : > { %272 = dma.vmem_to_hbm [thread:$0]  (%p644_p9), %s582_s29, 128, %s587_s18, %s159_s4  }
  0x62 PF: > { %s186_s25 = sand.u32 1, %s428_s6   ;;  %p645_p7 = scmp.ne.s32.totalorder %s640_s21, 0 }
  0x63   : > { %p646_p13 = scmp.ge.s32.totalorder %s448_s11, 2  ;;  %s187_s26 = scalar_lea.sflag [#allocation4], %s186_s25 }
  0x65   : > { %p279_p3 = pnand %p646_p13, %p645_p7 }
  0x67   : > { %423 = dma.done.wait (!%p279_p3), %s187_s26, 128  }
  0x68   : > { %425 = vsyncadd (!%p279_p3), %s187_s26, 4294967168  ;;  %s17_s11 = sadd.s32 1, %s448_s11   ;;  %s647_s6 = smov %s432_s7 }
  0x69   : > { %p14_p6 = scmp.ge.s32.totalorder %s17_s11, 4   ;;  %s648_s7 = smov %s436_s8 }
  0x6a   : > { %s649_s8 = smov %s518_s20  ;;  %s650_s9 = smov %s444_s10 }
  0x6b   : > { %s651_s10 = smov %s653_s14  ;;  %16 = sbr.rel (!%p14_p6) target bundleno = 6 (0x6), region = 69 }
  0x72   :  { %192 = vsyncpa [#allocation3], 1 }
  0x73   :  { %194 = vsyncpa [#allocation3 + $0x1], 1 }
  0x74   :  { %195 = vsyncpa [#allocation4], 1 }
  0x75   :  { %197 = vsyncpa [#allocation4 + $0x1], 1 }

</bundles_post_ra>
